<compile_context>
chip_gen: v7x
topology: tpu7x:2x2x1
jax: 0.10.0
libtpu: 0.0.40
codegen_flags: <defaults>
</compile_context>

<pallas_src>
from itertools import combinations

import numpy as np
import jax
import jax.numpy as jnp
from jax.experimental import pallas as pl
from jax.experimental.pallas import tpu as pltpu

MARGIN = 1.0
LANE = 128
BATCH_ALIGN = 256          # pad batch so 256-wide MXU tiles divide evenly
TRIPLET_CHUNK = 128        # triplets processed per grid step in the loss kernel


def _round_up(x, m):
    return ((x + m - 1) // m) * m


# --------------------------------------------------------------------------- #
# Kernel 1: K-tiled squared pairwise-distance matrix
#   D = -2 X X^T + |x|^2 + |x|^2^T
# --------------------------------------------------------------------------- #
def pdist_kernel(xr_ref, xc_ref, nr_ref, nc_ref, d_ref, acc_ref):
    """Grid (i, j, k): i/j tile the (Bp, Bp) output, k tiles the contraction dim."""
    k = pl.program_id(2)

    @pl.when(k == 0)
    def _init():
        acc_ref[...] = jnp.zeros_like(acc_ref)

    # Contract over the last dim of BOTH operands: no transpose / XLU relayout in
    # front of the MXU.  Inputs may be bf16 (large-D path); accumulate in f32.
    acc_ref[...] += jax.lax.dot_general(
        xr_ref[...], xc_ref[...],
        dimension_numbers=(((1,), (1,)), ((), ())),
        preferred_element_type=jnp.float32)

    @pl.when(k == pl.num_programs(2) - 1)
    def _finalize():
        # Norms are precomputed in f32 in the wrapper; arrive as tiny dense blocks.
        d_ref[...] = -2.0 * acc_ref[...] + nr_ref[...] + nc_ref[...]


def _choose_tiles(Bp, Dp):
    # 256 tiles fill the 2x256x256 MXU on v6e/v7x; drop to 128 when the grid would
    # collapse below 2x2 on the parallel axes (keeps both shardable on v7x's 2 TCs).
    if Bp % 256 == 0 and Bp >= 512:
        tm = tn = 256
    else:
        tm = tn = 128
    if Dp % 512 == 0:
        tk = 512
    elif Dp % 256 == 0:
        tk = 256
    else:
        tk = 128
    return tm, tn, tk


def pairwise_sq_dist(x_mat, sq_norms):
    """x_mat: (Bp, Dp) f32 or bf16; sq_norms: (Bp,) f32.  Returns (Bp, Bp) f32."""
    Bp, Dp = x_mat.shape
    tm, tn, tk = _choose_tiles(Bp, Dp)
    grid = (Bp // tm, Bp // tn, Dp // tk)

    norms_col = sq_norms.reshape(Bp, 1)
    norms_row = sq_norms.reshape(1, Bp)
    itemsize = int(np.dtype(x_mat.dtype).itemsize)

    # K-tiled VMEM footprint is bounded independent of D: double-buffered (tm,tk)
    # and (tn,tk) inputs + double-buffered (tm,tn) output + (tm,tn) accumulator.
    tile_bytes = (2 * itemsize * (tm + tn) * tk
                  + 2 * 4 * tm * tn
                  + 4 * tm * tn)
    vmem_limit = int(min(max(2 * tile_bytes, 16 * 1024 * 1024), 48 * 1024 * 1024))

    # NOTE: if a profile shows exposed DMA on the column stream (small tk / v5e),
    # add pipeline_mode=pl.Buffered(3) to the second in_spec.
    return pl.pallas_call(
        pdist_kernel,
        out_shape=jax.ShapeDtypeStruct((Bp, Bp), jnp.float32),
        grid_spec=pltpu.PrefetchScalarGridSpec(
            num_scalar_prefetch=0,
            grid=grid,
            in_specs=[pl.BlockSpec((tm, tk), lambda i, j, k: (i, k)),
                      pl.BlockSpec((tn, tk), lambda i, j, k: (j, k)),
                      pl.BlockSpec((tm, 1), lambda i, j, k: (i, 0)),
                      pl.BlockSpec((1, tn), lambda i, j, k: (0, j))],
            out_specs=pl.BlockSpec((tm, tn), lambda i, j, k: (i, j)),
            scratch_shapes=[pltpu.VMEM((tm, tn), jnp.float32)]),
        compiler_params=pltpu.CompilerParams(
            dimension_semantics=("parallel", "parallel", "arbitrary"),
            vmem_limit_bytes=vmem_limit),
        cost_estimate=pl.CostEstimate(
            flops=2 * Bp * Bp * Dp,
            transcendentals=0,
            # Row stream re-read once per col tile, col stream once per row tile.
            bytes_accessed=itemsize * Bp * Dp * (Bp // tm + Bp // tn)
                           + 4 * Bp * Bp + 2 * 4 * Bp),
    )(x_mat, x_mat, norms_col, norms_row)


# --------------------------------------------------------------------------- #
# Kernel 2: chunked hinge loss over gathered (anchor, positive, negative) rows
#   mean over valid t of relu(|a_t - p_t|^2 - |a_t - n_t|^2 + margin)
# --------------------------------------------------------------------------- #
def make_triplet_chunk_kernel(margin, chunk):
    def kernel(cnt_ref, a_ref, p_ref, n_ref, o_ref, acc_ref):
        c = pl.program_id(0)

        @pl.when(c == 0)
        def _init():
            acc_ref[...] = jnp.zeros_like(acc_ref)

        a = a_ref[...].astype(jnp.float32)            # (chunk, Dp)
        p = p_ref[...].astype(jnp.float32)
        n = n_ref[...].astype(jnp.float32)
        dp = a - p
        dn = a - n
        diff = dp * dp - dn * dn                      # fused: one cross-lane reduce
        hinge = jnp.maximum(jnp.sum(diff, axis=1, keepdims=True) + margin, 0.0)
        row = c * chunk + jax.lax.broadcasted_iota(jnp.int32, hinge.shape, 0)
        valid = (row < cnt_ref[0]).astype(jnp.float32)   # mask padded triplets
        acc_ref[...] += jnp.sum(hinge * valid, keepdims=True)

        @pl.when(c == pl.num_programs(0) - 1)
        def _finalize():
            denom = jnp.maximum(cnt_ref[0], 1).astype(jnp.float32)
            o_ref[...] = acc_ref[...] / denom

    return kernel


def fused_triplet_loss(a_rows, p_rows, n_rows, count, margin):
    """a/p/n rows: (Tp, Dp) f32 gathered embeddings; count: (1,) i32 valid triplets."""
    Tp, Dp = a_rows.shape
    chunk = TRIPLET_CHUNK
    assert Tp % chunk == 0
    grid = (Tp // chunk,)

    in_bytes = 3 * 2 * chunk * Dp * 4                 # three double-buffered inputs
    vmem_limit = int(min(max(in_bytes + (1 << 20), 16 * 1024 * 1024),
                         48 * 1024 * 1024))

    out = pl.pallas_call(
        make_triplet_chunk_kernel(margin, chunk),
        out_shape=jax.ShapeDtypeStruct((1, 1), jnp.float32),
        grid_spec=pltpu.PrefetchScalarGridSpec(
            num_scalar_prefetch=1,
            grid=grid,
            in_specs=[pl.BlockSpec((chunk, Dp), lambda c, cnt: (c, 0))
                      for _ in range(3)],
            out_specs=pl.BlockSpec((1, 1), lambda c, cnt: (0, 0)),
            scratch_shapes=[pltpu.VMEM((1, 1), jnp.float32)]),
        compiler_params=pltpu.CompilerParams(
            dimension_semantics=("arbitrary",),
            vmem_limit_bytes=vmem_limit),
        cost_estimate=pl.CostEstimate(
            flops=5 * Tp * Dp,
            transcendentals=0,
            bytes_accessed=4 * 3 * Tp * Dp + 4),
    )(count, a_rows, p_rows, n_rows)
    return out[0, 0]


# --------------------------------------------------------------------------- #
# Hardest-negative triplet selector (host-side glue, mirrors the PyTorch/CPU code)
# --------------------------------------------------------------------------- #
def hardest_negative(loss_values):
    hard = int(np.argmax(loss_values))
    return hard if loss_values[hard] > 0 else None


def get_triplets_hardest(distance_matrix, labels, margin):
    # TODO(synk): variable-length, data-dependent triplet enumeration has no clean
    # static-shape Pallas equivalent; reproduced in numpy exactly as the reference
    # (which itself runs this on CPU).
    labels = np.asarray(labels)
    distance_matrix = np.asarray(distance_matrix)
    triplets = []
    anchor_positive = None
    negative_indices = np.array([], dtype=np.int64)

    for label in sorted(set(labels.tolist())):
        label_mask = labels == label
        label_indices = np.where(label_mask)[0]
        if len(label_indices) < 2:
            continue
        negative_indices = np.where(np.logical_not(label_mask))[0]
        anchor_positives = np.array(list(combinations(label_indices, 2)))
        ap_distances = distance_matrix[anchor_positives[:, 0], anchor_positives[:, 1]]
        for anchor_positive, ap_distance in zip(anchor_positives, ap_distances):
            loss_values = (
                ap_distance
                - distance_matrix[anchor_positive[0], negative_indices]
                + margin
            )
            hard = hardest_negative(loss_values)
            if hard is not None:
                triplets.append(
                    [int(anchor_positive[0]), int(anchor_positive[1]),
                     int(negative_indices[hard])]
                )

    if len(triplets) == 0:
        # Fixed vs. the reference: guard against anchor_positive being undefined
        # (no label with >= 2 samples) and against a same-class "negative".
        if anchor_positive is not None and len(negative_indices) > 0:
            triplets.append([int(anchor_positive[0]), int(anchor_positive[1]),
                             int(negative_indices[0])])
        else:
            nb = len(labels)
            triplets.append([0, min(1, nb - 1), nb - 1])
    return np.array(triplets, dtype=np.int32)


# --------------------------------------------------------------------------- #
# OnlineTripletLoss forward
# --------------------------------------------------------------------------- #
def online_triplet_loss(embeddings, target, margin=MARGIN, gram_dtype=None):
    """embeddings: dict with 'feat' -> (B, D) f32; target: (B,) int labels."""
    feat = embeddings["feat"].astype(jnp.float32)
    B, D = feat.shape
    Bp = _round_up(B, BATCH_ALIGN)
    Dp = _round_up(D, LANE)
    feat_p = jnp.pad(feat, ((0, Bp - B), (0, Dp - D)))   # zero pad: distances of
                                                         # real rows are unchanged

    # Squared norms once in f32; fed to the kernel as tiny dense vectors instead of
    # being re-reduced per tile.
    sq_norms = jnp.sum(feat_p * feat_p, axis=1)

    # bf16 Gram path only when D is large enough for the matmul to matter (MXU
    # throughput + halved input DMA bytes); small D keeps f32 so hardest-negative
    # argmaxes cannot flip on near-ties vs. the f32 reference.
    if gram_dtype is None:
        gram_dtype = jnp.bfloat16 if Dp >= 512 else jnp.float32
    x_mat = feat_p.astype(gram_dtype)

    # Hot path 1: pairwise squared distances on TPU (K-tiled, parallel grid).
    dmat_p = pairwise_sq_dist(x_mat, sq_norms)

    # Slice on device BEFORE the host transfer: only (B, B) goes D2H, not (Bp, Bp).
    # TODO(synk): the device->host sync is inherent to reproducing the reference's
    # CPU-side mining; an on-device masked-argmax miner would remove this hop.
    dmat = np.asarray(jax.device_get(dmat_p[:B, :B]))
    triplets = get_triplets_hardest(dmat, np.asarray(target), margin)

    # Bucket T to a multiple of the chunk so the loss kernel is not recompiled per
    # step; padded triplets point at row 0 and are masked out of the mean by count.
    T = int(triplets.shape[0])
    Tp = _round_up(max(T, 1), TRIPLET_CHUNK)
    idx = np.zeros((Tp, 3), dtype=np.int32)
    idx[:T] = triplets
    idx_dev = jnp.asarray(idx)
    count = jnp.asarray([T], dtype=jnp.int32)

    # Gather a/p/n rows once in the wrapper; the kernel then streams aligned
    # (chunk, Dp) blocks — no per-triplet grid steps or tiny DMAs.
    a_rows = jnp.take(feat_p, idx_dev[:, 0], axis=0)
    p_rows = jnp.take(feat_p, idx_dev[:, 1], axis=0)
    n_rows = jnp.take(feat_p, idx_dev[:, 2], axis=0)

    # Hot path 2: chunked hinge + masked mean on TPU.
    return fused_triplet_loss(a_rows, p_rows, n_rows, count, margin)


# --------------------------------------------------------------------------- #
if __name__ == "__main__":
    key = jax.random.PRNGKey(0)
    B, D = 8, 32
    feat = jax.random.normal(key, (B, D), dtype=jnp.float32)
    target = jnp.array([0, 0, 1, 1, 2, 2, 3, 3], dtype=jnp.int32)

    loss = online_triplet_loss({"feat": feat}, target, margin=MARGIN)
    loss = jax.block_until_ready(loss)

    # reference check in plain numpy
    f = np.asarray(feat)
    dmat_ref = (
        -2 * f @ f.T + (f ** 2).sum(1)[None, :] + (f ** 2).sum(1)[:, None]
    )
    trip = get_triplets_hardest(dmat_ref, np.asarray(target), MARGIN)
    ap = ((f[trip[:, 0]] - f[trip[:, 1]]) ** 2).sum(1)
    an = ((f[trip[:, 0]] - f[trip[:, 2]]) ** 2).sum(1)
    ref = np.maximum(ap - an + MARGIN, 0.0).mean()
    np.testing.assert_allclose(np.asarray(loss), ref, rtol=1e-5, atol=1e-5)

    print("KERNEL_OK")
</pallas_src>

<mosaic_0001>
module attributes {stable_mosaic.version = 11 : i64} {
  func.func @pdist_kernel(%arg0: i32, %arg1: i32, %arg2: i32, %arg3: memref<128x128xf32, #tpu.memory_space<vmem>>, %arg4: memref<128x128xf32, #tpu.memory_space<vmem>>, %arg5: memref<128x1xf32, #tpu.memory_space<vmem>>, %arg6: memref<1x128xf32, #tpu.memory_space<vmem>>, %arg7: memref<128x128xf32, #tpu.memory_space<vmem>>, %arg8: memref<128x128xf32, #tpu.memory_space<vmem>>) attributes {dimension_semantics = [#tpu.dimension_semantics<parallel>, #tpu.dimension_semantics<parallel>, #tpu.dimension_semantics<arbitrary>], iteration_bounds = array<i64: 2, 2, 1>, scalar_prefetch = 0 : i64, scratch_operands = 1 : i64, tpu.core_type = #tpu.core_type<tc>, window_params = [{transform_indices = @transform_0, window_bounds = array<i64: 128, 128>}, {transform_indices = @transform_1, window_bounds = array<i64: 128, 128>}, {transform_indices = @transform_2, window_bounds = array<i64: 128, 1>}, {transform_indices = @transform_3, window_bounds = array<i64: 1, 128>}, {transform_indices = @transform_4, window_bounds = array<i64: 128, 128>}]} {
    %c0_i32 = arith.constant 0 : i32
    %0 = arith.cmpi eq, %arg2, %c0_i32 : i32
    %1 = arith.extui %0 : i1 to i32
    %c0_i32_0 = arith.constant 0 : i32
    %2 = arith.cmpi ne, %1, %c0_i32_0 : i32
    scf.if %2 {
      %cst_10 = arith.constant 0.000000e+00 : f32
      %12 = vector.broadcast %cst_10 : f32 to vector<128x128xf32>
      %c0_11 = arith.constant 0 : index
      %c0_12 = arith.constant 0 : index
      %13 = vector.load %arg8[%c0_11, %c0_12] : memref<128x128xf32, #tpu.memory_space<vmem>>, vector<128x128xf32>
      tpu.vector_store %arg8[%c0_11, %c0_12], %12 {strides = array<i32>} : memref<128x128xf32, #tpu.memory_space<vmem>>, vector<128x128xf32>,
    } else {
    }
    %c0 = arith.constant 0 : index
    %c0_1 = arith.constant 0 : index
    %3 = vector.load %arg8[%c0, %c0_1] : memref<128x128xf32, #tpu.memory_space<vmem>>, vector<128x128xf32>
    %c0_2 = arith.constant 0 : index
    %c0_3 = arith.constant 0 : index
    %4 = vector.load %arg3[%c0_2, %c0_3] : memref<128x128xf32, #tpu.memory_space<vmem>>, vector<128x128xf32>
    %c0_4 = arith.constant 0 : index
    %c0_5 = arith.constant 0 : index
    %5 = vector.load %arg4[%c0_4, %c0_5] : memref<128x128xf32, #tpu.memory_space<vmem>>, vector<128x128xf32>
    %cst = arith.constant dense<0.000000e+00> : vector<128x128xf32>
    %6 = tpu.matmul %4, %5, %cst {dimension_numbers = #tpu.dot_dimension_numbers<[1], [1], [0], [0], [0, 0, 1, 0], [], []>} : vector<128x128xf32>, vector<128x128xf32>, vector<128x128xf32> -> vector<128x128xf32>
    %7 = arith.addf %3, %6 : vector<128x128xf32>
    %c0_6 = arith.constant 0 : index
    %c0_7 = arith.constant 0 : index
    %8 = vector.load %arg8[%c0_6, %c0_7] : memref<128x128xf32, #tpu.memory_space<vmem>>, vector<128x128xf32>
    tpu.vector_store %arg8[%c0_6, %c0_7], %7 {strides = array<i32>} : memref<128x128xf32, #tpu.memory_space<vmem>>, vector<128x128xf32>,
    %c0_i32_8 = arith.constant 0 : i32
    %9 = arith.cmpi eq, %arg2, %c0_i32_8 : i32
    %10 = arith.extui %9 : i1 to i32
    %c0_i32_9 = arith.constant 0 : i32
    %11 = arith.cmpi ne, %10, %c0_i32_9 : i32
    scf.if %11 {
      %c0_10 = arith.constant 0 : index
      %c0_11 = arith.constant 0 : index
      %12 = vector.load %arg8[%c0_10, %c0_11] : memref<128x128xf32, #tpu.memory_space<vmem>>, vector<128x128xf32>
      %cst_12 = arith.constant -2.000000e+00 : f32
      %13 = vector.broadcast %cst_12 : f32 to vector<128x128xf32>
      %14 = arith.mulf %13, %12 : vector<128x128xf32>
      %c0_13 = arith.constant 0 : index
      %c0_14 = arith.constant 0 : index
      %15 = vector.load %arg5[%c0_13, %c0_14] : memref<128x1xf32, #tpu.memory_space<vmem>>, vector<128x1xf32>
      %16 = vector.broadcast %15 : vector<128x1xf32> to vector<128x128xf32>
      %17 = arith.addf %14, %16 : vector<128x128xf32>
      %c0_15 = arith.constant 0 : index
      %c0_16 = arith.constant 0 : index
      %18 = vector.load %arg6[%c0_15, %c0_16] : memref<1x128xf32, #tpu.memory_space<vmem>>, vector<1x128xf32>
      %19 = vector.broadcast %18 : vector<1x128xf32> to vector<128x128xf32>
      %20 = arith.addf %17, %19 : vector<128x128xf32>
      %c0_17 = arith.constant 0 : index
      %c0_18 = arith.constant 0 : index
      %21 = vector.load %arg7[%c0_17, %c0_18] : memref<128x128xf32, #tpu.memory_space<vmem>>, vector<128x128xf32>
      tpu.vector_store %arg7[%c0_17, %c0_18], %20 {strides = array<i32>} : memref<128x128xf32, #tpu.memory_space<vmem>>, vector<128x128xf32>,
    } else {
    }
    return
  }
  func.func @transform_0(%arg0: i32, %arg1: i32, %arg2: i32) -> (i32, i32) {
    %c0_i32 = arith.constant 0 : i32
    return %arg0, %arg2 : i32, i32
  }
  func.func @transform_1(%arg0: i32, %arg1: i32, %arg2: i32) -> (i32, i32) {
    %c0_i32 = arith.constant 0 : i32
    return %arg1, %arg2 : i32, i32
  }
  func.func @transform_2(%arg0: i32, %arg1: i32, %arg2: i32) -> (i32, i32) {
    %c0_i32 = arith.constant 0 : i32
    %c0_i32_0 = arith.constant 0 : i32
    return %arg0, %c0_i32 : i32, i32
  }
  func.func @transform_3(%arg0: i32, %arg1: i32, %arg2: i32) -> (i32, i32) {
    %c0_i32 = arith.constant 0 : i32
    %c0_i32_0 = arith.constant 0 : i32
    return %c0_i32, %arg1 : i32, i32
  }
  func.func @transform_4(%arg0: i32, %arg1: i32, %arg2: i32) -> (i32, i32) {
    %c0_i32 = arith.constant 0 : i32
    return %arg0, %arg1 : i32, i32
  }
}

</mosaic_0001>

<bundles_post_ra>
// kernel: tpu_custom_call.1
= control target key start
LH: loop header
LB: loop body
LE: loop exit
PB: predicated region body
PF: predicated region fallthrough
CT: control target
= control target key end

     0   :  { %9 = vsyncpa [#allocation4], 0  ;;  %s1685_s0 = inlined_call_operand.vmem [shape: f32[256,128], index: 0, kind: input, shape index: {}]   ;;  %s1686_s1 = inlined_call_operand.hbm [shape: f32[256,128], index: 1, kind: input, shape index: {}]   ;;  %s1687_s2 = inlined_call_operand.vmem [shape: f32[256,1], index: 2, kind: input, shape index: {}]   ;;  %s1688_s3 = inlined_call_operand.vmem [shape: f32[1,256], index: 3, kind: input, shape index: {}]   ;;  %s1689_s4 = inlined_call_operand.hbm [shape: f32[256,256], index: 4, kind: output, shape index: {}]  }
   0x1   :  { %11 = vsyncpa [#allocation4 + $0x1], 0 }
   0x2   :  { %12 = vsyncpa [#allocation5], 0 }
   0x3   :  { %14 = vsyncpa [#allocation5 + $0x1], 0  ;;  %s1341_s15 = smov 0   ;;  %s1343_s16 = smov 0  }
   0x4   :  { %s1345_s17 = smov 0   ;;  %s1347_s18 = smov 0  }
   0x5   :  { %s1349_s19 = smov 0   ;;  %s1351_s20 = smov 0  }
   0x6   :  { %s1353_s21 = smov 0   ;;  %s1355_s22 = smov 0  }
   0x7   :  { %s1357_s23 = smov 0   ;;  %s1359_s24 = smov 0  }
   0x8   :  { %s1361_s25 = smov 0  }
   0x9 LB: > { %s885_s26 = sadd.s32 4294967295, %s1306_s25   ;;  %s886_s27 = sadd.s32 4294967294, %s1306_s25   ;;  %s1306_s25 = sphi %s1361_s25, %s20_s25   ;;  %s1302_s24 = sphi %s1359_s24, %s1714_s24   ;;  %s1298_s23 = sphi %s1357_s23, %s1713_s23   ;;  %s1294_s22 = sphi %s1355_s22, %s1712_s22   ;;  %s1290_s21 = sphi %s1353_s21, %s1711_s21   ;;  %s1286_s20 = sphi %s1351_s20, %s1710_s20   ;;  %s1282_s19 = sphi %s1349_s19, %s1709_s19   ;;  %s1278_s18 = sphi %s1347_s18, %s1708_s18   ;;  %s1274_s17 = sphi %s1345_s17, %s1707_s17   ;;  %s1270_s16 = sphi %s1343_s16, %s1706_s16   ;;  %s1266_s15 = sphi %s1341_s15, %s1705_s15  }
   0xa   : > { %s35_s28 = sadd.s32 1, %s1298_s23  ;;  %s39_s29 = sadd.s32 1, %s1302_s24 }
   0xb   : > { %p37_p0 = scmp.ge.s32.totalorder %s35_s28, 2  ;;  %s76_s30 = sadd.s32 1, %s1286_s20 }
   0xc   : > { %p83_p1 = scmp.ne.s32.totalorder %s1286_s20, %s1282_s19  ;;  %p84_p2 = scmp.eq.s32.totalorder %s1306_s25, 0 }
   0xd   : > { %s1716_s28 = smov (%p37_p0, %s35_s28), 0  ;;  %s1718_s29 = smov (!%p37_p0, %s39_s29), %s1302_s24 }
   0xe   : > { %1693 = sst [smem:[#allocation9_spill]] %s1716_s28  ;;  %s71_s5 = ssub.s32 %s1298_s23, %s1716_s28 }
   0xf   : > { %p1407_p3 = por %p84_p2, %p83_p1  ;;  %p41_p4 = scmp.ge.s32.totalorder %s1718_s29, 2 }
  0x10   : > { %p74_p5 = scmp.eq.s32.totalorder %s71_s5, 0  ;;  %p89_p6 = scmp.ne.s32.totalorder %s1282_s19, %s1278_s18 }
  0x11   : > { %p90_p7 = scmp.eq.s32.totalorder %s885_s26, 0  ;;  %s1720_s29 = smov (%p41_p4, %s1718_s29), 0 }
  0x12   : > { %1695 = sst [smem:[#allocation10_spill]] %s1720_s29  ;;  %s151_s9 = ssub.s32 %s1302_s24, %s1720_s29 }
  0x13   : > { %s1415_s7 = scalar_select %p74_p5, %s1286_s20, %s76_s30  }
  0x14   : > { %p1417_p8 = por %p90_p7, %p89_p6  ;;  %s153_s10 = sor.u32 %s151_s9, %s71_s5 }
  0x15   : > { %s156_s11 = sadd.s32 1, %s1274_s17  ;;  %p154_p9 = scmp.eq.s32.totalorder %s153_s10, 0 }
  0x16   : > { %p166_p10 = scmp.ne.s32.totalorder %s1274_s17, %s1270_s16  ;;  %p167_p11 = scmp.eq.s32.totalorder %s885_s26, 3 }
  0x17   : > { %p172_p12 = scmp.ne.s32.totalorder %s1270_s16, %s1266_s15  ;;  %p173_p0 = scmp.eq.s32.totalorder %s886_s27, 3 }
  0x18   : > { %s1429_s12 = scalar_select %p154_p9, %s1274_s17, %s156_s11  }
  0x19   : > { %p1431_p13 = por %p167_p11, %p166_p10  ;;  %p1056_p1 = scmp.lt.s32.totalorder %s1306_s25, 4 }
  0x1a   : > { %p1436_p2 = por %p173_p0, %p172_p12  ;;  %s205_s18 = sand.u32 1, %s1286_s20  }
  0x1b   : > { %s1697_s13 = scalar_select %p1431_p13, 1, 0 }
  0x1c   : > { %s1698_s14 = scalar_select %p1436_p2, 1, 0 }
  0x1d   : > { %s889_s30 = sshll.u32 %s205_s18, 7  ;;  %s906_s5 = sshll.u32 %s1298_s23, 11 }
  0x1e   : > { %s1445_s26 = scalar_lea.hbm %s1686_s1, %s906_s5  ;;  %s209_s11 = scalar_lea.vmem [#allocation3], %s889_s30 }
  0x1f   : > { %s217_s29 = sshll.u32 %s209_s11, 4  ;;  %p1451_p4 = pnand %p1056_p1, %p1407_p3  ;;  %s1447_s29 = int_to_ptr.vmem [resolvable:$true] %s217_s29 }
  0x20   : > { %s1456_s28 = scalar_lea.sflag [#allocation4], %s205_s18  ;;  %s1154_s5 = scalar_lea.hbm %s1445_s26, 2048 }
  0x21   : > { %p1155_p6 = scmp.ne.s32.totalorder %s1445_s26, %s1154_s5  ;;  %p1156_p7 = pneg %p1451_p4 }
  0x22   : > { %s1159_s6 = scalar_lea.hbm %s1686_s1, 4096  ;;  %p1160_p3 = scmp.lt.u32.totalorder %s1445_s26, %s1686_s1 }
  0x23   : > { %p1157_p9 = pnand %p1156_p7, %p1155_p6  ;;  %p1161_p11 = scmp.lt.u32.totalorder %s1159_s6, %s1154_s5 }
  0x24   : > { %p1163_p0 = scmp.lt.u32.totalorder %s1154_s5, %s1445_s26 }
  0x25   : > { %p1158_p10 = pneg %p1157_p9  ;;  %p1162_p12 = por %p1161_p11, %p1160_p3 }
  0x27   : > { %p1164_p1 = por %p1163_p0, %p1162_p12 }
  0x29   : > { %p1165_p5 = pnand %p1164_p1, %p1158_p10 }
  0x2b   : > { %1168 = shalt.err (!%p1165_p5)
}
  0x2c   : > { %s1169_s18 = scalar_lea.vmem %s1447_s29, 2048  ;;  %s1308_s30 = smov [#allocation3]  }
  0x2d   : > { %p1170_p6 = scmp.ne.s32.totalorder %s1447_s29, %s1169_s18  ;;  %s1174_s9 = sshll.u32 %s1308_s30, 4  ;;  %s1175_s9 = int_to_ptr.vmem [resolvable:$false] %s1174_s9 }
  0x2e   : > { %s1176_s10 = scalar_lea.vmem %s1175_s9, 4096  ;;  %p1177_p13 = scmp.lt.s32.totalorder %s1447_s29, %s1175_s9 }
  0x2f   : > { %p1172_p9 = pnand %p1170_p6, %p1156_p7  ;;  %p1178_p3 = scmp.lt.s32.totalorder %s1176_s10, %s1169_s18 }
  0x31   : > { %p1173_p2 = pneg %p1172_p9  ;;  %p1179_p11 = por %p1178_p3, %p1177_p13 }
  0x33   : > { %p1180_p12 = pnand %p1179_p11, %p1173_p2 }
  0x35   : > { %1183 = shalt.err (!%p1180_p12)
}
  0x36   : > { %s1309_s5 = smov 128   ;;  %s1310_s6 = smov 8  }
  0x37   : > { %1051 = dma.hbm_to_vmem [thread:$0]  (!%p1451_p4), %s1445_s26, 2048, %s1447_s29, %s1456_s28, %s1309_s5, %s1309_s5, %s1310_s6  }
  0x38   : > { %p240_p5 = scmp.lt.s32.totalorder %s1306_s25, 5  ;;  %p1700_p7 = scmp.ge.s32.totalorder %s1306_s25, 1 }
  0x3a   : > { %p241_p10 = pnand %p1700_p7, %p240_p5 }
  0x3b   : > { %s246_s11 = sand.u32 (!%p241_p10), 1, %s1282_s19  }
  0x3c   : > { %244 = sbr.rel (%p241_p10) target bundleno = 382 (0x17e), region = 36  ;;  %s893_s18 = sshll.u32 (!%p241_p10), %s246_s11, 7 }
  0x3d   : > { %s247_s30 = scalar_lea.sflag (!%p241_p10), [#allocation4], %s246_s11  ;;  %s1488_s9 = scalar_lea.vmem (!%p241_p10), [#allocation3], %s893_s18 }
  0x43   : > { %1257 = dma.done.wait (%p1417_p8), %s247_s30, 2048  }
  0x44   : > { %1259 = vsyncadd (%p1417_p8), %s247_s30, 4294965248  ;;  %s895_s28 = sshll.u32 %s1294_s22, 4  ;;  %v1311_v0 = vmov 0   ;;  %v363_v1 = vld [vmem:[%s1488_s9] sm:$0xff]  ;;  %v364_v2 = vld [vmem:[%s1488_s9 + $0x8] sm:$0xff]  ;;  %p307_p8 = scmp.lt.s32.totalorder %s1290_s21, 1 }
  0x45   : > { %p292_p13 = scmp.lt.s32.totalorder %s895_s28, 31  ;;  %1153 = vset.pattern.permute.xlu1 %v1311_v0  ;;  %1152 = vset.pattern.permute.xlu0 %v1311_v0  ;;  %v365_v3 = vld [vmem:[%s1488_s9 + $0x10] sm:$0xff]  ;;  %v996_v4 = vpack.c.bf16 %v364_v2, %v363_v1  ;;  %v366_v5 = vld [vmem:[%s1488_s9 + $0x18] sm:$0xff]  ;;  %v367_v9 = vld [vmem:[%s1488_s9 + $0x20] sm:$0xff]  ;;  %s288_s18 = sand.u32 1, %s1270_s16  }
  0x46   : > { %v1000_v6 = vpack.c.bf16 %v366_v5, %v365_v3  ;;  %v368_v10 = vld [vmem:[%s1488_s9 + $0x28] sm:$0xff]  ;;  %v369_v15 = vld [vmem:[%s1488_s9 + $0x30] sm:$0xff]  ;;  %v370_v16 = vld [vmem:[%s1488_s9 + $0x38] sm:$0xff]  ;;  %s308_s11 = scalar_select %p307_p8, %s1290_s21, 1 }
  0x47   : > { %s1722_s28 = smov (!%p292_p13, %s895_s28), 31  ;;  %997 = vmatprep.subr.bf16.mxu0 %v996_v4  ;;  %1028 = vmatprep.subr.bf16.mxu1 %v996_v4  ;;  %v1004_v11 = vpack.c.bf16 %v368_v10, %v367_v9  ;;  %v1008_v19 = vpack.c.bf16 %v370_v16, %v369_v15  ;;  %v371_v22 = vld [vmem:[%s1488_s9 + $0x40] sm:$0xff]  ;;  %v372_v23 = vld [vmem:[%s1488_s9 + $0x48] sm:$0xff]  ;;  %v373_v29 = vld [vmem:[%s1488_s9 + $0x50] sm:$0xff]  ;;  %s907_s26 = sshll.u32 %s1294_s22, 5 }
  0x48   : > { %s896_s29 = sshll.u32 %s1722_s28, 3  ;;  %999 = vmatpush3.bf16.xpose.msra.mxu0 %v996_v4  ;;  %1036 = vmatpush3.bf16.xpose.msra.mxu1 %v996_v4  ;;  %v1012_v26 = vpack.c.bf16 %v372_v23, %v371_v22  ;;  %v374_v30 = vld [vmem:[%s1488_s9 + $0x58] sm:$0xff]  ;;  %v375_v36 = vld [vmem:[%s1488_s9 + $0x60] sm:$0xff]  ;;  %v376_v37 = vld [vmem:[%s1488_s9 + $0x68] sm:$0xff]  ;;  %s309_s28 = scalar_lea.vmem %s1688_s3, %s308_s11 }
  0x49   : > { %s1502_s27 = scalar_lea.vmem %s1685_s0, %s896_s29  ;;  %1001 = vmatprep.subr.bf16.mxu0 %v1000_v6  ;;  %1029 = vmatprep.subr.bf16.mxu1 %v1000_v6  ;;  %s1511_s6 = scalar_lea.vmem %s1687_s2, %s896_s29  ;;  %v1016_v33 = vpack.c.bf16 %v374_v30, %v373_v29  ;;  %v1020_v39 = vpack.c.bf16 %v376_v37, %v375_v36  ;;  %v377_v40 = vld [vmem:[%s1488_s9 + $0x70] sm:$0xff]  ;;  %v378_v41 = vld [vmem:[%s1488_s9 + $0x78] sm:$0xff] }
  0x4a   : > { %v347_v7 = vld [vmem:[%s1502_s27] sm:$0xff]  ;;  %v593_v12 = vld [vmem:[%s1511_s6 + $0x10] sm:$0xff]  ;;  %v594_v14 = vld [vmem:[%s1511_s6 + $0x18] sm:$0xff]  ;;  %v1024_v42 = vpack.c.bf16 %v378_v41, %v377_v40  ;;  %s894_s29 = sshll.u32 %s288_s18, 7  ;;  %s1587_s22 = sadd.s32 %s1290_s21, %s907_s26 }
  0x4b   : > { %v355_v8 = vld [vmem:[%s1502_s27 + $0x40] sm:$0xff]  ;;  %972 = vmatprep.mubr.f32.mxu0 %v347_v7  ;;  %619 = vperm.xlu1 %1153, %v593_v12   ;;  %v592_v17 = vld [vmem:[%s1511_s6 + $0x8] sm:$0xff]  ;;  %v598_v21 = vld [vmem:[%s1511_s6 + $0x38] sm:$0xff]  ;;  %s1575_s8 = scalar_lea.vmem [#allocation6], %s894_s29  ;;  %s903_s21 = sshll.u32 %s1587_s22, 7 }
  0x4c   : > { %984 = vmatprep.mubr.f32.mxu1 %v355_v8  ;;  %v591_v13 = vld [vmem:[%s1511_s6] sm:$0xff]  ;;  %v596_v18 = vld [vmem:[%s1511_s6 + $0x28] sm:$0xff]  ;;  %v597_v24 = vld [vmem:[%s1511_s6 + $0x30] sm:$0xff]  ;;  %s1624_s11 = scalar_lea.sflag [#allocation5], %s288_s18  ;;  %p1701_p4 = scmp.ne.s32.totalorder %s1697_s13, 0 }
  0x4d   : > { %609 = vperm.xlu0 %1152, %v591_v13   ;;  %v595_v20 = vld [vmem:[%s1511_s6 + $0x20] sm:$0xff]  ;;  %v600_v25 = vld [vmem:[%s1511_s6 + $0x48] sm:$0xff]  ;;  %v602_v28 = vld [vmem:[%s1511_s6 + $0x58] sm:$0xff]  ;;  %s1312_s9 = smov [#allocation6]  }
  0x4e   : > { %v599_v27 = vld [vmem:[%s1511_s6 + $0x40] sm:$0xff]  ;;  %v601_v31 = vld [vmem:[%s1511_s6 + $0x50] sm:$0xff]  ;;  %v604_v32 = vld [vmem:[%s1511_s6 + $0x68] sm:$0xff] }
  0x4f   : > { %624 = vperm.xlu1 %1153, %v594_v14   ;;  %v603_v34 = vld [vmem:[%s1511_s6 + $0x60] sm:$0xff]  ;;  %v606_v35 = vld [vmem:[%s1511_s6 + $0x78] sm:$0xff]  ;;  %v605_v38 = vld [vmem:[%s1511_s6 + $0x70] sm:$0xff]  ;;  %s1610_s6 = scalar_lea.hbm %s1689_s4, %s903_s21 }
  0x50   : > { %1003 = vmatpush3.bf16.xpose.msra.mxu0 %v1000_v6  ;;  %1037 = vmatpush3.bf16.xpose.msra.mxu1 %v1000_v6  ;;  %v348_v43 = vld [vmem:[%s1502_s27 + $0x8] sm:$0xff]  ;;  %v349_v45 = vld [vmem:[%s1502_s27 + $0x10] sm:$0xff]  ;;  %v350_v47 = vld [vmem:[%s1502_s27 + $0x18] sm:$0xff] }
  0x51   : > { %1005 = vmatprep.subr.bf16.mxu0 %v1004_v11  ;;  %1030 = vmatprep.subr.bf16.mxu1 %v1004_v11  ;;  %v356_v44 = vld [vmem:[%s1502_s27 + $0x48] sm:$0xff]  ;;  %v357_v46 = vld [vmem:[%s1502_s27 + $0x50] sm:$0xff]  ;;  %v358_v48 = vld [vmem:[%s1502_s27 + $0x58] sm:$0xff] }
  0x52   : > { %614 = vperm.xlu0 %1152, %v592_v17   ;;  %v351_v49 = vld [vmem:[%s1502_s27 + $0x20] sm:$0xff]  ;;  %v352_v51 = vld [vmem:[%s1502_s27 + $0x28] sm:$0xff]  ;;  %v353_v53 = vld [vmem:[%s1502_s27 + $0x30] sm:$0xff] }
  0x53   : > { %634 = vperm.xlu1 %1153, %v596_v18   ;;  %v359_v50 = vld [vmem:[%s1502_s27 + $0x60] sm:$0xff]  ;;  %v360_v52 = vld [vmem:[%s1502_s27 + $0x68] sm:$0xff]  ;;  %v361_v54 = vld [vmem:[%s1502_s27 + $0x70] sm:$0xff] }
  0x54   : > { %v354_v55 = vld [vmem:[%s1502_s27 + $0x38] sm:$0xff] }
  0x55   : > { %v362_v56 = vld [vmem:[%s1502_s27 + $0x78] sm:$0xff]  ;;  %s758_s27 = sshll.u32 %s1575_s8, 4  ;;  %s1614_s27 = int_to_ptr.vmem [resolvable:$true] %s758_s27 }
  0x56   : > { %629 = vperm.xlu0 %1152, %v595_v20   ;;  %s1184_s30 = scalar_lea.vmem %s1614_s27, 2048 }
  0x57   : > { %644 = vperm.xlu1 %1153, %v598_v21   ;;  %p1185_p2 = scmp.ne.s32.totalorder %s1614_s27, %s1184_s30 }
  0x58   : > { %1007 = vmatpush3.bf16.xpose.msra.mxu0 %v1004_v11  ;;  %1038 = vmatpush3.bf16.xpose.msra.mxu1 %v1004_v11  ;;  %v1569_v11 = vld [vmem:[%s309_s28] ss:$0 sm:$0xff]  ;;  %s1188_s28 = sshll.u32 %s1312_s9, 4  ;;  %s1189_s28 = int_to_ptr.vmem [resolvable:$false] %s1188_s28 }
  0x59   : > { %1009 = vmatprep.subr.bf16.mxu0 %v1008_v19  ;;  %1031 = vmatprep.subr.bf16.mxu1 %v1008_v19  ;;  %p1186_p0 = pnand %p1185_p2, %p1701_p4  ;;  %s1190_s29 = scalar_lea.vmem %s1189_s28, 4096 }
  0x5a   : > { %639 = vperm.xlu0 %1152, %v597_v24   ;;  %p1191_p6 = scmp.lt.s32.totalorder %s1614_s27, %s1189_s28  ;;  %p1192_p9 = scmp.lt.s32.totalorder %s1190_s29, %s1184_s30 }
  0x5b   : > { %654 = vperm.xlu1 %1153, %v600_v25   ;;  %p1187_p1 = pneg %p1186_p0 }
  0x5c   : > { %p1193_p3 = por %p1192_p9, %p1191_p6 }
  0x5e   : > { %649 = vperm.xlu0 %1152, %v599_v27   ;;  %p1194_p11 = pnand %p1193_p3, %p1187_p1 }
  0x5f   : > { %664 = vperm.xlu1 %1153, %v602_v28  }
  0x60   : > { %1011 = vmatpush3.bf16.xpose.msra.mxu0 %v1008_v19  ;;  %1039 = vmatpush3.bf16.xpose.msra.mxu1 %v1008_v19 }
  0x61   : > { %1013 = vmatprep.subr.bf16.mxu0 %v1012_v26  ;;  %1032 = vmatprep.subr.bf16.mxu1 %v1012_v26 }
  0x62   : > { %659 = vperm.xlu0 %1152, %v601_v31  }
  0x63   : > { %674 = vperm.xlu1 %1153, %v604_v32  }
  0x66   : > { %669 = vperm.xlu0 %1152, %v603_v34  }
  0x67   : > { %684 = vperm.xlu1 %1153, %v606_v35  }
  0x68   : > { %1015 = vmatpush3.bf16.xpose.msra.mxu0 %v1012_v26  ;;  %1040 = vmatpush3.bf16.xpose.msra.mxu1 %v1012_v26 }
  0x69   : > { %1017 = vmatprep.subr.bf16.mxu0 %v1016_v33  ;;  %1033 = vmatprep.subr.bf16.mxu1 %v1016_v33 }
  0x6a   : > { %679 = vperm.xlu0 %1152, %v605_v38  }
  0x70   : > { %1019 = vmatpush3.bf16.xpose.msra.mxu0 %v1016_v33  ;;  %1041 = vmatpush3.bf16.xpose.msra.mxu1 %v1016_v33 }
  0x71   : > { %1021 = vmatprep.subr.bf16.mxu0 %v1020_v39  ;;  %1034 = vmatprep.subr.bf16.mxu1 %v1020_v39 }
  0x78   : > { %1023 = vmatpush3.bf16.xpose.msra.mxu0 %v1020_v39  ;;  %1042 = vmatpush3.bf16.xpose.msra.mxu1 %v1020_v39 }
  0x79   : > { %1025 = vmatprep.subr.bf16.mxu0 %v1024_v42  ;;  %1035 = vmatprep.subr.bf16.mxu1 %v1024_v42 }
  0x80   : > { %1027 = vmatpush3.bf16.xpose.msra.mxu0 %v1024_v42  ;;  %1043 = vmatpush3.bf16.xpose.msra.mxu1 %v1024_v42 }
  0x87   : > { %973 = vmatmul.mubr.f32.vlgmr.msra.gmra.mrb[0].mxu0 %v348_v43  ;;  %985 = vmatmul.mubr.f32.vlgmr.msra.gmra.mrb[0].mxu1 %v356_v44 }
  0x88   : > { %975 = vmatprep.mubr.f32.mxu0 %v349_v45  ;;  %987 = vmatprep.mubr.f32.mxu1 %v357_v46 }
  0x8b   : > { %976 = vmatmul.mubr.f32.gmra.mrb[2].mxu0 %v350_v47  ;;  %988 = vmatmul.mubr.f32.gmra.mrb[2].mxu1 %v358_v48 }
  0x8c   : > { %978 = vmatprep.mubr.f32.mxu0 %v351_v49  ;;  %990 = vmatprep.mubr.f32.mxu1 %v359_v50 }
  0x8f   : > { %979 = vmatmul.mubr.f32.gmra.mrb[4].mxu0 %v352_v51  ;;  %991 = vmatmul.mubr.f32.gmra.mrb[4].mxu1 %v360_v52 }
  0x90   : > { %981 = vmatprep.mubr.f32.mxu0 %v353_v53  ;;  %993 = vmatprep.mubr.f32.mxu1 %v361_v54 }
  0x93   : > { %982 = vmatmul.mubr.f32.gmra.mrb[6].mxu0 %v354_v55  ;;  %994 = vmatmul.mubr.f32.gmra.mrb[6].mxu1 %v362_v56 }
  0xca   : > { %v620_v57 = vpop.permute.xlu1 %619 }
  0xcc   : > { %v610_v58 = vpop.permute.xlu0 %609 }
  0xce   : > { %v625_v59 = vpop.permute.xlu1 %624 }
  0xd1   : > { %v615_v60 = vpop.permute.xlu0 %614 }
  0xd2   : > { %v1553_v61 = vpop.permute.xlu1 %634 }
  0xd5   : > { %v1555_v62 = vpop.permute.xlu0 %629 }
  0xd6   : > { %v1557_v63 = vpop.permute.xlu1 %644 }
  0xd9   : > { %v1559_v0 = vpop.permute.xlu0 %639 }
  0xda   : > { %v655_v1 = vpop.permute.xlu1 %654 }
  0xdd   : > { %v650_v2 = vpop.permute.xlu0 %649 }
  0xde   : > { %v665_v3 = vpop.permute.xlu1 %664 }
  0xe1   : > { %v660_v4 = vpop.permute.xlu0 %659 }
  0xe2   : > { %v675_v30 = vpop.permute.xlu1 %674 }
  0xe5   : > { %v670_v31 = vpop.permute.xlu0 %669 }
 0x15a   : > { %v974_v5 = vpop.f32.mrb[0].mxu0  ;;  %v986_v6 = vpop.f32.mrb[0].mxu1 }
 0x15b   : > { %v576_v7 = vmul.f32 -2.0, %v974_v5  ;;  %v584_v8 = vmul.f32 -2.0, %v986_v6  ;;  %v445_v9 = vpop.f32.mrb[1].mxu0  ;;  %v485_v10 = vpop.f32.mrb[1].mxu1 }
 0x15c   : > { %v575_v12 = vmul.f32 -2.0, %v445_v9  ;;  %v583_v13 = vmul.f32 -2.0, %v485_v10 }
 0x15d   : > { %v688_v14 = vadd.f32 %v615_v60, %v576_v7  ;;  %v696_v15 = vadd.f32 %v655_v1, %v584_v8  ;;  %v685_v60 = vpop.permute.xlu1 %684 }
 0x15e   : > { %v687_v16 = vadd.f32 %v610_v58, %v575_v12  ;;  %v695_v17 = vadd.f32 %v650_v2, %v583_v13  ;;  %v977_v18 = vpop.f32.mrb[2].mxu0  ;;  %v989_v19 = vpop.f32.mrb[2].mxu1 }
 0x15f   : > { %v711_v20 = vadd.f32 %v1569_v11, %v688_v14  ;;  %v719_v21 = vadd.f32 %v1569_v11, %v696_v15  ;;  %v578_v22 = vmul.f32 -2.0, %v977_v18  ;;  %v586_v23 = vmul.f32 -2.0, %v989_v19  ;;  %v455_v24 = vpop.f32.mrb[3].mxu0  ;;  %v495_v25 = vpop.f32.mrb[3].mxu1 }
 0x160   : > { %v710_v26 = vadd.f32 %v1569_v11, %v687_v16  ;;  %v718_v27 = vadd.f32 %v1569_v11, %v695_v17  ;;  %v577_v28 = vmul.f32 -2.0, %v455_v24  ;;  %v585_v29 = vmul.f32 -2.0, %v495_v25 }
 0x161   : > { %727 = vst [vmem:[%s1575_s8 + $0x8] sm:$0xff] %v711_v20  ;;  %735 = vst [vmem:[%s1575_s8 + $0x48] sm:$0xff] %v719_v21  ;;  %v690_v32 = vadd.f32 %v625_v59, %v578_v22  ;;  %v698_v33 = vadd.f32 %v665_v3, %v586_v23  ;;  %v680_v3 = vpop.permute.xlu0 %679 }
 0x162   : > { %726 = vst [vmem:[%s1575_s8] sm:$0xff] %v710_v26  ;;  %734 = vst [vmem:[%s1575_s8 + $0x40] sm:$0xff] %v718_v27  ;;  %v689_v34 = vadd.f32 %v620_v57, %v577_v28  ;;  %v697_v35 = vadd.f32 %v660_v4, %v585_v29  ;;  %v980_v36 = vpop.f32.mrb[4].mxu0  ;;  %v992_v37 = vpop.f32.mrb[4].mxu1 }
 0x163   : > { %v713_v38 = vadd.f32 %v1569_v11, %v690_v32  ;;  %v721_v39 = vadd.f32 %v1569_v11, %v698_v33  ;;  %v580_v40 = vmul.f32 -2.0, %v980_v36  ;;  %v588_v41 = vmul.f32 -2.0, %v992_v37  ;;  %v465_v42 = vpop.f32.mrb[5].mxu0  ;;  %v505_v43 = vpop.f32.mrb[5].mxu1 }
 0x164   : > { %v712_v44 = vadd.f32 %v1569_v11, %v689_v34  ;;  %v720_v45 = vadd.f32 %v1569_v11, %v697_v35  ;;  %v579_v46 = vmul.f32 -2.0, %v465_v42  ;;  %v587_v47 = vmul.f32 -2.0, %v505_v43 }
 0x165   : > { %729 = vst [vmem:[%s1575_s8 + $0x18] sm:$0xff] %v713_v38  ;;  %737 = vst [vmem:[%s1575_s8 + $0x58] sm:$0xff] %v721_v39  ;;  %v692_v48 = vadd.f32 %v1553_v61, %v580_v40  ;;  %v700_v49 = vadd.f32 %v675_v30, %v588_v41 }
 0x166   : > { %728 = vst [vmem:[%s1575_s8 + $0x10] sm:$0xff] %v712_v44  ;;  %736 = vst [vmem:[%s1575_s8 + $0x50] sm:$0xff] %v720_v45  ;;  %v691_v50 = vadd.f32 %v1555_v62, %v579_v46  ;;  %v699_v51 = vadd.f32 %v670_v31, %v587_v47  ;;  %v983_v52 = vpop.f32.mrb[6].mxu0  ;;  %v995_v53 = vpop.f32.mrb[6].mxu1 }
 0x167   : > { %v715_v54 = vadd.f32 %v1569_v11, %v692_v48  ;;  %v723_v55 = vadd.f32 %v1569_v11, %v700_v49  ;;  %v582_v56 = vmul.f32 -2.0, %v983_v52  ;;  %v590_v57 = vmul.f32 -2.0, %v995_v53  ;;  %v475_v58 = vpop.f32.mrb[7].mxu0  ;;  %v515_v59 = vpop.f32.mrb[7].mxu1 }
 0x168   : > { %v714_v61 = vadd.f32 %v1569_v11, %v691_v50  ;;  %v722_v62 = vadd.f32 %v1569_v11, %v699_v51  ;;  %v581_v1 = vmul.f32 -2.0, %v475_v58  ;;  %v589_v2 = vmul.f32 -2.0, %v515_v59 }
 0x169   : > { %731 = vst [vmem:[%s1575_s8 + $0x28] sm:$0xff] %v715_v54  ;;  %739 = vst [vmem:[%s1575_s8 + $0x68] sm:$0xff] %v723_v55  ;;  %v694_v4 = vadd.f32 %v1557_v63, %v582_v56  ;;  %v702_v5 = vadd.f32 %v685_v60, %v590_v57 }
 0x16a   : > { %730 = vst [vmem:[%s1575_s8 + $0x20] sm:$0xff] %v714_v61  ;;  %738 = vst [vmem:[%s1575_s8 + $0x60] sm:$0xff] %v722_v62  ;;  %v693_v6 = vadd.f32 %v1559_v0, %v581_v1  ;;  %v701_v7 = vadd.f32 %v680_v3, %v589_v2 }
 0x16b   : > { %v717_v8 = vadd.f32 %v1569_v11, %v694_v4  ;;  %v725_v9 = vadd.f32 %v1569_v11, %v702_v5 }
 0x16c   : > { %v716_v63 = vadd.f32 %v1569_v11, %v693_v6  ;;  %v724_v10 = vadd.f32 %v1569_v11, %v701_v7 }
 0x16d   : > { %733 = vst [vmem:[%s1575_s8 + $0x38] sm:$0xff] %v717_v8  ;;  %741 = vst [vmem:[%s1575_s8 + $0x78] sm:$0xff] %v725_v9 }
 0x16e   : > { %732 = vst [vmem:[%s1575_s8 + $0x30] sm:$0xff] %v716_v63  ;;  %740 = vst [vmem:[%s1575_s8 + $0x70] sm:$0xff] %v724_v10 }
 0x16f   : > { %1197 = shalt.err (!%p1194_p11)
}
 0x170   : > { %s1198_s18 = scalar_lea.hbm %s1610_s6, 2048  ;;  %s1202_s22 = scalar_lea.hbm %s1689_s4, 8192 }
 0x171   : > { %p1199_p12 = scmp.ne.s32.totalorder %s1610_s6, %s1198_s18  ;;  %p1203_p10 = scmp.lt.u32.totalorder %s1610_s6, %s1689_s4 }
 0x172   : > { %p1204_p13 = scmp.lt.u32.totalorder %s1202_s22, %s1198_s18  ;;  %p1206_p2 = scmp.lt.u32.totalorder %s1198_s18, %s1610_s6 }
 0x173   : > { %p1200_p5 = pnand %p1199_p12, %p1701_p4 }
 0x174   : > { %p1205_p8 = por %p1204_p13, %p1203_p10 }
 0x175   : > { %p1201_p7 = pneg %p1200_p5 }
 0x176   : > { %p1207_p0 = por %p1206_p2, %p1205_p8 }
 0x178   : > { %p1208_p1 = pnand %p1207_p0, %p1201_p7 }
 0x17a   : > { %1211 = shalt.err (!%p1208_p1)
}
 0x17b   : > { %s1313_s5 = smov 128   ;;  %s1314_s30 = smov 256  }
 0x17c   : > { %s1315_s9 = smov 8  }
 0x17d   : > { %1046 = dma.vmem_to_hbm [thread:$0]  (%p1701_p4), %s1614_s27, 2048, %s1610_s6, %s1624_s11, %s1313_s5, %s1314_s30, %s1315_s9  }
 0x17e PF: > { %p1057_p6 = scmp.ge.s32.totalorder %s1306_s25, 2  ;;  %s773_s28 = sand.u32 1, %s1266_s15  }
 0x17f   : > { %p1702_p9 = scmp.ne.s32.totalorder %s1698_s14, 0  ;;  %s774_s29 = scalar_lea.sflag [#allocation5], %s773_s28 }
 0x181   : > { %p1053_p3 = pnand %p1057_p6, %p1702_p9 }
 0x183   : > { %1261 = dma.done.wait (!%p1053_p3), %s774_s29, 2048  }
 0x184   : > { %1263 = vsyncadd (!%p1053_p3), %s774_s29, 4294965248  ;;  %s20_s25 = sadd.s32 1, %s1306_s25   ;;  %s1703_s13 = sld [smem:[#allocation9_spill]] }
 0x185   : > { %p17_p11 = scmp.ge.s32.totalorder %s20_s25, 6   ;;  %s1704_s27 = sld [smem:[#allocation10_spill]] }
 0x186   : > { %s1705_s15 = smov %s1270_s16  ;;  %s1706_s16 = smov %s1274_s17 }
 0x187   : > { %s1707_s17 = smov %s1429_s12  ;;  %s1708_s18 = smov %s1282_s19 }
 0x188   : > { %s1709_s19 = smov %s1286_s20  ;;  %s1710_s20 = smov %s1415_s7 }
 0x189   : > { %s1711_s21 = smov %s1298_s23  ;;  %s1712_s22 = smov %s1302_s24 }
 0x18a   : > { %s1713_s23 = smov %s1703_s13  ;;  %19 = sbr.rel (!%p17_p11) target bundleno = 9 (0x9), region = 98 }
 0x18b   : > { %s1714_s24 = smov %s1704_s27 }
 0x191   :  { %779 = vsyncpa [#allocation4], 1 }
 0x192   :  { %781 = vsyncpa [#allocation4 + $0x1], 1 }
 0x193   :  { %782 = vsyncpa [#allocation5], 1 }
 0x194   :  { %784 = vsyncpa [#allocation5 + $0x1], 1 }

</bundles_post_ra>
